<compile_context>
chip_gen: v5e
topology: v5e:2x2
jax: 0.10.0
libtpu: 0.0.40
codegen_flags: <defaults>
</compile_context>

<pallas_src>
import jax
import jax.numpy as jnp
from jax import lax
from jax.experimental import pallas as pl
from jax.experimental.pallas import tpu as pltpu

BN_EPS = 1e-5
VMEM_LIMIT = 32 * 1024 * 1024  # safe on v5e/v6e (128 MiB phys) and v7x (64 MiB phys)


def _round_up(x, m):
    return ((x + m - 1) // m) * m


# ----------------------------------------------------------------------------
# Kernels
# ----------------------------------------------------------------------------
def stats_kernel(x_ref, w1_ref, sum_ref, sq_ref):
    """Pass A: accumulate per-column sum / sum-of-squares of h = x @ W1."""
    i = pl.program_id(0)

    h = jnp.dot(x_ref[...], w1_ref[...], preferred_element_type=jnp.float32)
    tile_sum = jnp.sum(h, axis=0, keepdims=True)
    tile_sq = jnp.sum(h * h, axis=0, keepdims=True)

    @pl.when(i == 0)
    def _():
        sum_ref[...] = jnp.zeros_like(sum_ref)
        sq_ref[...] = jnp.zeros_like(sq_ref)

    sum_ref[...] += tile_sum
    sq_ref[...] += tile_sq


def mlp_bn_kernel(x_ref, w1_ref, scale_ref, shift_ref, w2_ref, b2_ref, o_ref):
    """Pass B: (x @ W1) * scale + shift -> ReLU -> @ W2 + b2.  BN folded into
    a single affine (scale/shift) per column; b1 cancelled by BN."""
    h = jnp.dot(x_ref[...], w1_ref[...], preferred_element_type=jnp.float32)
    h = jnp.maximum(h * scale_ref[...] + shift_ref[...], 0.0)
    o_ref[...] = (
        jnp.dot(h, w2_ref[...], preferred_element_type=jnp.float32) + b2_ref[...]
    ).astype(o_ref.dtype)


def mlp_nobn_kernel(x_ref, w1_ref, b1_ref, w2_ref, b2_ref, o_ref):
    """use_bn=False path: Linear -> ReLU -> Linear (bias kept, no BN)."""
    h = jnp.maximum(
        jnp.dot(x_ref[...], w1_ref[...], preferred_element_type=jnp.float32)
        + b1_ref[...],
        0.0,
    )
    o_ref[...] = (
        jnp.dot(h, w2_ref[...], preferred_element_type=jnp.float32) + b2_ref[...]
    ).astype(o_ref.dtype)


# ----------------------------------------------------------------------------
# Wrapper
# ----------------------------------------------------------------------------
def mlp_forward(params, adj_unused, x, use_bn=True, tile_n=512):
    """Mirrors MLP.forward(self, _, x). `adj_unused` is ignored (as in the module)."""
    del adj_unused
    w1, b1 = params["w1"], params["b1"]
    gamma, beta = params["gamma"], params["beta"]
    w2, b2 = params["w2"], params["b2"]

    N, nfeat = x.shape
    nhid = w1.shape[1]
    nclass = w2.shape[1]

    # Pad feature dims to lane width (128) and rows to a multiple of TILE_N.
    P_F = _round_up(nfeat, 128)
    P_H = _round_up(nhid, 128)
    P_C = _round_up(nclass, 128)
    TILE_N = max(8, min(tile_n, _round_up(N, 8)))
    TILE_N = _round_up(TILE_N, 8)
    N_pad = _round_up(N, TILE_N)
    num_tiles = N_pad // TILE_N

    f32 = jnp.float32
    x_p = jnp.zeros((N_pad, P_F), f32).at[:N, :nfeat].set(x.astype(f32))
    w1_p = jnp.zeros((P_F, P_H), f32).at[:nfeat, :nhid].set(w1)
    w2_p = jnp.zeros((P_H, P_C), f32).at[:nhid, :nclass].set(w2)
    b2_p = jnp.zeros((1, P_C), f32).at[:, :nclass].set(b2.reshape(1, nclass))

    resident = lambda shape: pl.BlockSpec(shape, lambda i: (0, 0))
    row_tile = lambda cols: pl.BlockSpec((TILE_N, cols), lambda i: (i, 0))

    cp_arb = pltpu.CompilerParams(
        dimension_semantics=("arbitrary",), vmem_limit_bytes=VMEM_LIMIT
    )
    cp_par = pltpu.CompilerParams(
        dimension_semantics=("parallel",), vmem_limit_bytes=VMEM_LIMIT
    )

    if use_bn:
        # ---- Pass A: batch statistics of h = x @ W1 (b1 cancels under BN) ----
        col_sum, col_sq = pl.pallas_call(
            stats_kernel,
            out_shape=(
                jax.ShapeDtypeStruct((1, P_H), f32),
                jax.ShapeDtypeStruct((1, P_H), f32),
            ),
            grid=(num_tiles,),
            in_specs=[row_tile(P_F), resident((P_F, P_H))],
            out_specs=(resident((1, P_H)), resident((1, P_H))),
            compiler_params=cp_arb,
        )(x_p, w1_p)

        # Tiny per-column math (nhid elems): fold BN into one affine. Padded
        # zero rows of x contribute exactly 0 to both sums, so divide by true N.
        inv_n = jnp.float32(1.0 / N)
        mean = col_sum * inv_n
        var = jnp.maximum(col_sq * inv_n - mean * mean, 0.0)  # biased var, like PyTorch
        gamma_p = jnp.zeros((1, P_H), f32).at[:, :nhid].set(gamma.reshape(1, nhid))
        beta_p = jnp.zeros((1, P_H), f32).at[:, :nhid].set(beta.reshape(1, nhid))
        scale = gamma_p * lax.rsqrt(var + BN_EPS)
        shift = beta_p - mean * scale

        # ---- Pass B: normalize + ReLU + layer2, fully parallel over row tiles ----
        out_p = pl.pallas_call(
            mlp_bn_kernel,
            out_shape=jax.ShapeDtypeStruct((N_pad, P_C), f32),
            grid=(num_tiles,),
            in_specs=[
                row_tile(P_F),
                resident((P_F, P_H)),
                resident((1, P_H)),
                resident((1, P_H)),
                resident((P_H, P_C)),
                resident((1, P_C)),
            ],
            out_specs=row_tile(P_C),
            compiler_params=cp_par,
        )(x_p, w1_p, scale, shift, w2_p, b2_p)
    else:
        b1_p = jnp.zeros((1, P_H), f32).at[:, :nhid].set(b1.reshape(1, nhid))
        out_p = pl.pallas_call(
            mlp_nobn_kernel,
            out_shape=jax.ShapeDtypeStruct((N_pad, P_C), f32),
            grid=(num_tiles,),
            in_specs=[
                row_tile(P_F),
                resident((P_F, P_H)),
                resident((1, P_H)),
                resident((P_H, P_C)),
                resident((1, P_C)),
            ],
            out_specs=row_tile(P_C),
            compiler_params=cp_par,
        )(x_p, w1_p, b1_p, w2_p, b2_p)

    return out_p[:N, :nclass]


# ----------------------------------------------------------------------------
# Params / reference
# ----------------------------------------------------------------------------
def init_params(key, nfeat, nhid, nclass):
    """Deterministic synthetic init (shapes match nn.Linear / nn.BatchNorm1d)."""
    k1, k2, k3, k4 = jax.random.split(key, 4)
    lim1 = 1.0 / jnp.sqrt(nfeat)
    lim2 = 1.0 / jnp.sqrt(nhid)
    return {
        "w1": jax.random.uniform(k1, (nfeat, nhid), jnp.float32, -lim1, lim1),
        "b1": jax.random.uniform(k2, (1, nhid), jnp.float32, -lim1, lim1),
        "gamma": jnp.ones((1, nhid), jnp.float32),
        "beta": jnp.zeros((1, nhid), jnp.float32),
        "w2": jax.random.uniform(k3, (nhid, nclass), jnp.float32, -lim2, lim2),
        "b2": jax.random.uniform(k4, (1, nclass), jnp.float32, -lim2, lim2),
    }


def reference_forward(params, x, use_bn=True):
    """Pure-JAX reference for correctness check."""
    h = x @ params["w1"] + params["b1"]
    if use_bn:
        mean = jnp.mean(h, axis=0, keepdims=True)
        var = jnp.mean((h - mean) ** 2, axis=0, keepdims=True)
        h = (h - mean) / jnp.sqrt(var + BN_EPS) * params["gamma"] + params["beta"]
    h = jnp.maximum(h, 0.0)
    return h @ params["w2"] + params["b2"]


if __name__ == "__main__":
    # Small but non-trivial shapes: N not a multiple of 8, tile_n=32 forces a
    # multi-tile grid so the stats accumulator path (pl.when init + +=) is hit.
    N, nfeat, nhid, nclass = 70, 16, 32, 8
    key = jax.random.PRNGKey(0)
    kx, kp = jax.random.split(key)

    x = jax.random.normal(kx, (N, nfeat), jnp.float32)
    params = init_params(kp, nfeat, nhid, nclass)

    # BN path (training-mode batch statistics)
    out_bn = jax.block_until_ready(mlp_forward(params, None, x, use_bn=True, tile_n=32))
    ref_bn = reference_forward(params, x, use_bn=True)
    assert out_bn.shape == (N, nclass)
    assert jnp.allclose(out_bn, ref_bn, atol=1e-4, rtol=1e-4), "BN path mismatch"

    # no-BN path
    out_nb = jax.block_until_ready(mlp_forward(params, None, x, use_bn=False, tile_n=32))
    ref_nb = reference_forward(params, x, use_bn=False)
    assert out_nb.shape == (N, nclass)
    assert jnp.allclose(out_nb, ref_nb, atol=1e-4, rtol=1e-4), "no-BN path mismatch"

    print("KERNEL_OK")
</pallas_src>

<mosaic_0001>
module attributes {stable_mosaic.version = 11 : i64} {
  func.func @stats_kernel(%arg0: i32, %arg1: memref<32x128xf32, #tpu.memory_space<vmem>>, %arg2: memref<128x128xf32, #tpu.memory_space<vmem>>, %arg3: memref<1x128xf32, #tpu.memory_space<vmem>>, %arg4: memref<1x128xf32, #tpu.memory_space<vmem>>) attributes {dimension_semantics = [#tpu.dimension_semantics<arbitrary>], iteration_bounds = array<i64: 3>, scalar_prefetch = 0 : i64, scratch_operands = 0 : i64, tpu.core_type = #tpu.core_type<tc>, window_params = [{transform_indices = @transform_0, window_bounds = array<i64: 32, 128>}, {pipeline_mode = #tpu.pipeline_mode<synchronous>, transform_indices = @transform_1, window_bounds = array<i64: 128, 128>}, {pipeline_mode = #tpu.pipeline_mode<synchronous>, transform_indices = @transform_2, window_bounds = array<i64: 1, 128>}, {pipeline_mode = #tpu.pipeline_mode<synchronous>, transform_indices = @transform_3, window_bounds = array<i64: 1, 128>}]} {
    %c0 = arith.constant 0 : index
    %c0_0 = arith.constant 0 : index
    %0 = vector.load %arg1[%c0, %c0_0] : memref<32x128xf32, #tpu.memory_space<vmem>>, vector<32x128xf32>
    %c0_1 = arith.constant 0 : index
    %c0_2 = arith.constant 0 : index
    %1 = vector.load %arg2[%c0_1, %c0_2] : memref<128x128xf32, #tpu.memory_space<vmem>>, vector<128x128xf32>
    %cst = arith.constant dense<0.000000e+00> : vector<32x128xf32>
    %2 = tpu.matmul %0, %1, %cst {dimension_numbers = #tpu.dot_dimension_numbers<[1], [0], [0], [1], [0, 0, 1, 1], [], []>} : vector<32x128xf32>, vector<128x128xf32>, vector<32x128xf32> -> vector<32x128xf32>
    %cst_3 = arith.constant dense<0.000000e+00> : vector<128xf32>
    %3 = vector.multi_reduction <add>, %2, %cst_3 [0] : vector<32x128xf32> to vector<128xf32>
    %4 = vector.shape_cast %3 : vector<128xf32> to vector<1x128xf32>
    %5 = arith.mulf %2, %2 : vector<32x128xf32>
    %cst_4 = arith.constant dense<0.000000e+00> : vector<128xf32>
    %6 = vector.multi_reduction <add>, %5, %cst_4 [0] : vector<32x128xf32> to vector<128xf32>
    %7 = vector.shape_cast %6 : vector<128xf32> to vector<1x128xf32>
    %c0_i32 = arith.constant 0 : i32
    %8 = arith.cmpi eq, %arg0, %c0_i32 : i32
    %9 = arith.extui %8 : i1 to i32
    %c0_i32_5 = arith.constant 0 : i32
    %10 = arith.cmpi ne, %9, %c0_i32_5 : i32
    scf.if %10 {
      %cst_14 = arith.constant 0.000000e+00 : f32
      %17 = vector.broadcast %cst_14 : f32 to vector<1x128xf32>
      %c0_15 = arith.constant 0 : index
      %c0_16 = arith.constant 0 : index
      %18 = vector.load %arg3[%c0_15, %c0_16] : memref<1x128xf32, #tpu.memory_space<vmem>>, vector<1x128xf32>
      tpu.vector_store %arg3[%c0_15, %c0_16], %17 {strides = array<i32>} : memref<1x128xf32, #tpu.memory_space<vmem>>, vector<1x128xf32>,
      %cst_17 = arith.constant 0.000000e+00 : f32
      %19 = vector.broadcast %cst_17 : f32 to vector<1x128xf32>
      %c0_18 = arith.constant 0 : index
      %c0_19 = arith.constant 0 : index
      %20 = vector.load %arg4[%c0_18, %c0_19] : memref<1x128xf32, #tpu.memory_space<vmem>>, vector<1x128xf32>
      tpu.vector_store %arg4[%c0_18, %c0_19], %19 {strides = array<i32>} : memref<1x128xf32, #tpu.memory_space<vmem>>, vector<1x128xf32>,
    } else {
    }
    %c0_6 = arith.constant 0 : index
    %c0_7 = arith.constant 0 : index
    %11 = vector.load %arg3[%c0_6, %c0_7] : memref<1x128xf32, #tpu.memory_space<vmem>>, vector<1x128xf32>
    %12 = arith.addf %11, %4 : vector<1x128xf32>
    %c0_8 = arith.constant 0 : index
    %c0_9 = arith.constant 0 : index
    %13 = vector.load %arg3[%c0_8, %c0_9] : memref<1x128xf32, #tpu.memory_space<vmem>>, vector<1x128xf32>
    tpu.vector_store %arg3[%c0_8, %c0_9], %12 {strides = array<i32>} : memref<1x128xf32, #tpu.memory_space<vmem>>, vector<1x128xf32>,
    %c0_10 = arith.constant 0 : index
    %c0_11 = arith.constant 0 : index
    %14 = vector.load %arg4[%c0_10, %c0_11] : memref<1x128xf32, #tpu.memory_space<vmem>>, vector<1x128xf32>
    %15 = arith.addf %14, %7 : vector<1x128xf32>
    %c0_12 = arith.constant 0 : index
    %c0_13 = arith.constant 0 : index
    %16 = vector.load %arg4[%c0_12, %c0_13] : memref<1x128xf32, #tpu.memory_space<vmem>>, vector<1x128xf32>
    tpu.vector_store %arg4[%c0_12, %c0_13], %15 {strides = array<i32>} : memref<1x128xf32, #tpu.memory_space<vmem>>, vector<1x128xf32>,
    return
  }
  func.func @transform_0(%arg0: i32) -> (i32, i32) {
    %c0_i32 = arith.constant 0 : i32
    %c0_i32_0 = arith.constant 0 : i32
    return %arg0, %c0_i32 : i32, i32
  }
  func.func @transform_1(%arg0: i32) -> (i32, i32) {
    %c0_i32 = arith.constant 0 : i32
    %c0_i32_0 = arith.constant 0 : i32
    %c0_i32_1 = arith.constant 0 : i32
    return %c0_i32, %c0_i32_0 : i32, i32
  }
  func.func @transform_2(%arg0: i32) -> (i32, i32) {
    %c0_i32 = arith.constant 0 : i32
    %c0_i32_0 = arith.constant 0 : i32
    %c0_i32_1 = arith.constant 0 : i32
    return %c0_i32, %c0_i32_0 : i32, i32
  }
  func.func @transform_3(%arg0: i32) -> (i32, i32) {
    %c0_i32 = arith.constant 0 : i32
    %c0_i32_0 = arith.constant 0 : i32
    %c0_i32_1 = arith.constant 0 : i32
    return %c0_i32, %c0_i32_0 : i32, i32
  }
}

</mosaic_0001>

<bundles_post_ra>
// kernel: tpu_custom_call.1
= control target key start
LH: loop header
LB: loop body
LE: loop exit
PB: predicated region body
PF: predicated region fallthrough
CT: control target
= control target key end

     0   :  { %9 = vsyncpa [#allocation3], 0  ;;  %s827_s0 = inlined_call_operand.hbm [shape: f32[96,128], index: 0, kind: input, shape index: {}]   ;;  %s828_s1 = inlined_call_operand.hbm [shape: f32[128,128], index: 1, kind: input, shape index: {}]   ;;  %s829_s2 = inlined_call_operand.hbm [shape: f32[1,128], index: 2, kind: output, shape index: {0}]   ;;  %s830_s3 = inlined_call_operand.hbm [shape: f32[1,128], index: 3, kind: output, shape index: {1}]  }
   0x1   :  { %11 = vsyncpa [#allocation3 + $0x1], 0 }
   0x2   :  { %12 = vsyncpa [#allocation6], 0 }
   0x3   :  { %13 = vsyncpa [#allocation4], 0 }
   0x4   :  { %14 = vsyncpa [#allocation9], 0  ;;  %s695_s12 = smov 0   ;;  %s697_s13 = smov 0  }
   0x5   :  { %s699_s14 = smov 0   ;;  %s701_s15 = smov 0  }
   0x6 LB: > { %s714_s16 = sadd.s32 4294967295, %s667_s15   ;;  %p40_p0 = scmp.ne.s32.totalorder %s659_s13, %s655_s12  ;;  %s667_s15 = sphi %s701_s15, %s837_s15   ;;  %s663_s14 = sphi %s699_s14, %s836_s14   ;;  %s659_s13 = sphi %s697_s13, %s835_s13   ;;  %s655_s12 = sphi %s695_s12, %s834_s12  }
   0x7   : > { %p41_p1 = scmp.eq.s32.totalorder %s714_s16, 0  ;;  %p373_p2 = scmp.ge.s32.totalorder %s667_s15, 1 }
   0x8   : > { %p114_p3 = scmp.lt.s32.totalorder %s667_s15, 4  ;;  %p374_p4 = scmp.ne.s32.totalorder %s714_s16, 0 }
   0x9   : > { %p723_p5 = por %p41_p1, %p40_p0  ;;  %s125_s20 = sshll.u32 %s828_s1, 4  ;;  %s126_s20 = int_to_ptr.hbm [resolvable:$true] %s125_s20 }
   0xa   : > { %p730_p6 = pnand %p373_p2, %p114_p3  ;;  %s669_s22 = smov [#allocation5]  }
   0xb   : > { %s127_s23 = sshll.u32 %s669_s22, 4  ;;  %s739_s24 = sadd.s32 1, %s667_s15   ;;  %s128_s23 = int_to_ptr.vmem [resolvable:$true] %s127_s23 }
   0xc   : > { %p452_p7 = pneg %p730_p6  ;;  %s670_s25 = smov 128  }
   0xd   : > { %s671_s26 = smov 8   ;;  %s24_s27 = ssub.s32 %s667_s15, %s739_s24 }
   0xe   : > { %p453_p8 = pnand %p452_p7, %p41_p1  ;;  %s27_s28 = sadd.s32 1, %s663_s14 }
   0xf   : > { %p25_p9 = scmp.eq.s32.totalorder %s24_s27, 0  ;;  %p34_p10 = scmp.ne.s32.totalorder %s663_s14, %s659_s13 }
  0x10   : > { %455 = dma.hbm_to_vmem [thread:$0]  (!%p453_p8), %s126_s20, 2048, %s128_s23, [#allocation6], %s670_s25, %s670_s25, %s671_s26  }
  0x11   : > { %p35_p11 = scmp.eq.s32.totalorder %s667_s15, 0  ;;  %p461_p12 = scmp.lt.s32.totalorder %s667_s15, 3 }
  0x12   : > { %s752_s29 = scalar_select %p25_p9, %s663_s14, %s27_s28  }
  0x13   : > { %p36_p13 = por %p35_p11, %p34_p10  ;;  %s141_s30 = sand.u32 1, %s663_s14  }
  0x14   : > { %s376_s4 = sshll.u32 %s141_s30, 5  ;;  %s389_s5 = sshll.u32 %s667_s15, 5 }
  0x15   : > { %s150_s8 = scalar_lea.hbm %s827_s0, %s389_s5  ;;  %s145_s9 = scalar_lea.vmem [#allocation2], %s376_s4 }
  0x16   : > { %s153_s10 = sshll.u32 %s145_s9, 4  ;;  %s151_s11 = sshll.u32 %s150_s8, 4  ;;  %s154_s10 = int_to_ptr.vmem [resolvable:$true] %s153_s10  ;;  %s152_s11 = int_to_ptr.hbm [resolvable:$true] %s151_s11 }
  0x17   : > { %p759_p0 = pnand %p461_p12, %p36_p13  ;;  %s142_s18 = scalar_lea.sflag [#allocation3], %s141_s30 }
  0x18   : > { %s535_s19 = sshra.s32 %s152_s11, 4  ;;  %s542_s23 = scalar_lea.hbm %s827_s0, 96  ;;  %s536_s19 = int_to_ptr.hbm [resolvable:$true] %s535_s19 }
  0x19   : > { %s537_s20 = scalar_lea.hbm %s536_s19, 32  ;;  %p539_p3 = pneg %p759_p0 }
  0x1a   : > { %p538_p2 = scmp.ne.s32.totalorder %s536_s19, %s537_s20  ;;  %p543_p9 = scmp.lt.s32.totalorder %s536_s19, %s827_s0 }
  0x1b   : > { %p544_p10 = scmp.lt.s32.totalorder %s542_s23, %s537_s20 }
  0x1c   : > { %p540_p7 = pnand %p539_p3, %p538_p2 }
  0x1d   : > { %p545_p11 = por %p544_p10, %p543_p9 }
  0x1e   : > { %p541_p8 = pneg %p540_p7 }
  0x20   : > { %p546_p12 = pnand %p545_p11, %p541_p8 }
  0x22   : > { %549 = shalt.err (!%p546_p12)
}
  0x23   : > { %459 = dma.hbm_to_vmem [thread:$0]  (!%p759_p0), %s152_s11, 512, %s154_s10, %s142_s18, %s670_s25, %s670_s25, %s671_s26  }
  0x24   : > { %165 = sbr.rel (%p730_p6) target bundleno = 243 (0xf3), region = 28  ;;  %s167_s30 = sand.u32 (!%p730_p6), 1, %s659_s13  }
  0x25   : > { %s380_s4 = sshll.u32 (!%p730_p6), %s167_s30, 5  ;;  %s168_s5 = scalar_lea.sflag (!%p730_p6), [#allocation3], %s167_s30 }
  0x26   : > { %s779_s6 = scalar_lea.vmem (!%p730_p6), [#allocation2], %s380_s4 }
  0x29   : > { %638 = dma.done.wait (%p723_p5), %s168_s5, 512  }
  0x2a   : > { %640 = vsyncadd (%p723_p5), %s168_s5, 4294966784 }
  0x2b   : > { %642 = dma.done.wait (%p41_p1), [#allocation6], 2048  }
  0x2c   : > { %644 = vsyncadd (%p41_p1), [#allocation6], 4294965248  ;;  %v215_v0 = vld [vmem:[#allocation5 + $0x78] sm:$0xff]  ;;  %v214_v1 = vld [vmem:[#allocation5 + $0x70] sm:$0xff] }
  0x2d   : > { %391 = vmatpush.msra.mxu2 %v215_v0  ;;  %392 = vmatpush.msra.mxu3 %v215_v0  ;;  %v213_v2 = vld [vmem:[#allocation5 + $0x68] sm:$0xff]  ;;  %v212_v3 = vld [vmem:[#allocation5 + $0x60] sm:$0xff]  ;;  %v211_v4 = vld [vmem:[#allocation5 + $0x58] sm:$0xff] }
  0x2e   : > { %216 = vmatpush.msra.mxu0 %v215_v0  ;;  %390 = vmatpush.msra.mxu1 %v215_v0  ;;  %v210_v5 = vld [vmem:[#allocation5 + $0x50] sm:$0xff]  ;;  %v209_v6 = vld [vmem:[#allocation5 + $0x48] sm:$0xff]  ;;  %v208_v7 = vld [vmem:[#allocation5 + $0x40] sm:$0xff] }
  0x2f   : > { %394 = vmatpush.msra.mxu2 %v214_v1  ;;  %395 = vmatpush.msra.mxu3 %v214_v1  ;;  %v207_v8 = vld [vmem:[#allocation5 + $0x38] sm:$0xff]  ;;  %v206_v9 = vld [vmem:[#allocation5 + $0x30] sm:$0xff]  ;;  %v205_v10 = vld [vmem:[#allocation5 + $0x28] sm:$0xff] }
  0x30   : > { %217 = vmatpush.msra.mxu0 %v214_v1  ;;  %393 = vmatpush.msra.mxu1 %v214_v1  ;;  %v204_v11 = vld [vmem:[#allocation5 + $0x20] sm:$0xff]  ;;  %v203_v12 = vld [vmem:[#allocation5 + $0x18] sm:$0xff]  ;;  %v202_v13 = vld [vmem:[#allocation5 + $0x10] sm:$0xff] }
  0x31   : > { %397 = vmatpush.msra.mxu2 %v213_v2  ;;  %398 = vmatpush.msra.mxu3 %v213_v2  ;;  %v201_v14 = vld [vmem:[#allocation5 + $0x8] sm:$0xff]  ;;  %v200_v15 = vld [vmem:[#allocation5] sm:$0xff]  ;;  %v198_v16 = vld [vmem:[%s779_s6 + $0x10] sm:$0xff] }
  0x32   : > { %218 = vmatpush.msra.mxu0 %v213_v2  ;;  %396 = vmatpush.msra.mxu1 %v213_v2  ;;  %v199_v17 = vld [vmem:[%s779_s6 + $0x18] sm:$0xff]  ;;  %v196_v18 = vld [vmem:[%s779_s6] sm:$0xff]  ;;  %v197_v19 = vld [vmem:[%s779_s6 + $0x8] sm:$0xff] }
  0x33   : > { %400 = vmatpush.msra.mxu2 %v212_v3  ;;  %401 = vmatpush.msra.mxu3 %v212_v3 }
  0x34   : > { %219 = vmatpush.msra.mxu0 %v212_v3  ;;  %399 = vmatpush.msra.mxu1 %v212_v3 }
  0x35   : > { %403 = vmatpush.msra.mxu2 %v211_v4  ;;  %404 = vmatpush.msra.mxu3 %v211_v4 }
  0x36   : > { %220 = vmatpush.msra.mxu0 %v211_v4  ;;  %402 = vmatpush.msra.mxu1 %v211_v4 }
  0x37   : > { %406 = vmatpush.msra.mxu2 %v210_v5  ;;  %407 = vmatpush.msra.mxu3 %v210_v5 }
  0x38   : > { %221 = vmatpush.msra.mxu0 %v210_v5  ;;  %405 = vmatpush.msra.mxu1 %v210_v5 }
  0x39   : > { %409 = vmatpush.msra.mxu2 %v209_v6  ;;  %410 = vmatpush.msra.mxu3 %v209_v6 }
  0x3a   : > { %222 = vmatpush.msra.mxu0 %v209_v6  ;;  %408 = vmatpush.msra.mxu1 %v209_v6 }
  0x3b   : > { %412 = vmatpush.msra.mxu2 %v208_v7  ;;  %413 = vmatpush.msra.mxu3 %v208_v7 }
  0x3c   : > { %223 = vmatpush.msra.mxu0 %v208_v7  ;;  %411 = vmatpush.msra.mxu1 %v208_v7 }
  0x3d   : > { %415 = vmatpush.msra.mxu2 %v207_v8  ;;  %416 = vmatpush.msra.mxu3 %v207_v8 }
  0x3e   : > { %224 = vmatpush.msra.mxu0 %v207_v8  ;;  %414 = vmatpush.msra.mxu1 %v207_v8 }
  0x3f   : > { %418 = vmatpush.msra.mxu2 %v206_v9  ;;  %419 = vmatpush.msra.mxu3 %v206_v9 }
  0x40   : > { %225 = vmatpush.msra.mxu0 %v206_v9  ;;  %417 = vmatpush.msra.mxu1 %v206_v9 }
  0x41   : > { %421 = vmatpush.msra.mxu2 %v205_v10  ;;  %422 = vmatpush.msra.mxu3 %v205_v10 }
  0x42   : > { %226 = vmatpush.msra.mxu0 %v205_v10  ;;  %420 = vmatpush.msra.mxu1 %v205_v10 }
  0x43   : > { %424 = vmatpush.msra.mxu2 %v204_v11  ;;  %425 = vmatpush.msra.mxu3 %v204_v11 }
  0x44   : > { %227 = vmatpush.msra.mxu0 %v204_v11  ;;  %423 = vmatpush.msra.mxu1 %v204_v11 }
  0x45   : > { %427 = vmatpush.msra.mxu2 %v203_v12  ;;  %428 = vmatpush.msra.mxu3 %v203_v12 }
  0x46   : > { %228 = vmatpush.msra.mxu0 %v203_v12  ;;  %426 = vmatpush.msra.mxu1 %v203_v12 }
  0x47   : > { %430 = vmatpush.msra.mxu2 %v202_v13  ;;  %431 = vmatpush.msra.mxu3 %v202_v13 }
  0x48   : > { %229 = vmatpush.msra.mxu0 %v202_v13  ;;  %429 = vmatpush.msra.mxu1 %v202_v13 }
  0x49   : > { %433 = vmatpush.msra.mxu2 %v201_v14  ;;  %434 = vmatpush.msra.mxu3 %v201_v14 }
  0x4a   : > { %230 = vmatpush.msra.mxu0 %v201_v14  ;;  %432 = vmatpush.msra.mxu1 %v201_v14 }
  0x4b   : > { %436 = vmatpush.msra.mxu2 %v200_v15  ;;  %437 = vmatpush.msra.mxu3 %v200_v15 }
  0x4c   : > { %238 = vmatmul.f32.vlgmr.msra.gmra.mxu2 %v198_v16  ;;  %241 = vmatmul.f32.vlgmr.msra.gmra.mxu3 %v199_v17 }
  0x4d   : > { %231 = vmatpush.msra.mxu0 %v200_v15  ;;  %435 = vmatpush.msra.mxu1 %v200_v15 }
  0x4e   : > { %232 = vmatmul.f32.vlgmr.msra.gmra.mxu0 %v196_v18  ;;  %235 = vmatmul.f32.vlgmr.msra.gmra.mxu1 %v197_v19 }
  0xcb   : > { %v233_v20 = vpop.f32.mrf.mxu0  ;;  %v236_v21 = vpop.f32.mrf.mxu1 }
  0xcc   : > { %v254_v22 = vmul.f32 %v233_v20, %v233_v20  ;;  %v245_v23 = vadd.f32 %v236_v21, %v233_v20  ;;  %v255_v24 = vmul.f32 %v236_v21, %v236_v21 }
  0xce   : > { %v258_v25 = vadd.f32 %v255_v24, %v254_v22 }
  0xcf   : > { %v239_v26 = vpop.f32.mrf.mxu2  ;;  %v242_v27 = vpop.f32.mrf.mxu3 }
  0xd0   : > { %v246_v28 = vadd.f32 %v245_v23, %v239_v26  ;;  %v256_v29 = vmul.f32 %v239_v26, %v239_v26  ;;  %v257_v30 = vmul.f32 %v242_v27, %v242_v27 }
  0xd2   : > { %v259_v31 = vadd.f32 %v258_v25, %v256_v29  ;;  %v247_v32 = vadd.f32 %v246_v28, %v242_v27 }
  0xd4   : > { %v248_v33 = vrot.slane %v247_v32, 4  ;;  %v260_v34 = vadd.f32 %v259_v31, %v257_v30 }
  0xd6   : > { %v249_v35 = vadd.f32 %v248_v33, %v247_v32  ;;  %v261_v36 = vrot.slane %v260_v34, 4 }
  0xd8   : > { %v250_v37 = vrot.slane %v249_v35, 2  ;;  %v262_v38 = vadd.f32 %v261_v36, %v260_v34 }
  0xda   : > { %v251_v39 = vadd.f32 %v250_v37, %v249_v35  ;;  %v263_v40 = vrot.slane %v262_v38, 2 }
  0xdc   : > { %v252_v41 = vrot.slane %v251_v39, 1  ;;  %v264_v42 = vadd.f32 %v263_v40, %v262_v38  ;;  %270 = sbr.rel (%p374_p4) target bundleno = 228 (0xe4), region = 40 }
  0xde   : > { %v253_v43 = vadd.f32 %v252_v41, %v251_v39  ;;  %v265_v44 = vrot.slane %v264_v42, 1 }
  0xe0   : > { %v266_v45 = vadd.f32 %v265_v44, %v264_v42 }
  0xe1   : > { %v672_v46 = vmov 0.0  }
  0xe2   : > { %271 = vst [vmem:[#allocation7] sm:$0x1] %v672_v46 }
  0xe3   : > { %272 = vst [vmem:[#allocation8] sm:$0x1] %v672_v46 }
  0xe4 PF: > { %p463_p1 = scmp.eq.s32.totalorder %s714_s16, 2  ;;  %s287_s25 = sshll.u32 %s829_s2, 4  ;;  %s288_s25 = int_to_ptr.hbm [resolvable:$true] %s287_s25 }
  0xe5   : > { %s673_s26 = smov [#allocation7]   ;;  %s674_s8 = smov [#allocation8]  }
  0xe6   : > { %s285_s7 = sshll.u32 %s673_s26, 4  ;;  %s297_s9 = sshll.u32 %s674_s8, 4  ;;  %s286_s7 = int_to_ptr.vmem [resolvable:$true] %s285_s7  ;;  %s298_s9 = int_to_ptr.vmem [resolvable:$true] %s297_s9 }
  0xe7   : > { %s299_s12 = sshll.u32 %s830_s3, 4  ;;  %s300_s12 = int_to_ptr.hbm [resolvable:$true] %s299_s12 }
  0xe9   : > { %v273_v47 = vld [vmem:[#allocation7] sm:$0x1] }
  0xea   : > { %v276_v48 = vld [vmem:[#allocation8] sm:$0x1]  ;;  %v274_v49 = vadd.f32 %v273_v47, %v253_v43 }
  0xeb   : > { %v277_v50 = vadd.f32 %v276_v48, %v266_v45 }
  0xec   : > { %275 = vst [vmem:[#allocation7] sm:$0x1] %v274_v49 }
  0xed   : > { %278 = vst [vmem:[#allocation8] sm:$0x1] %v277_v50  ;;  %445 = dma.vmem_to_hbm [thread:$0]  (%p463_p1), %s286_s7, 16, %s288_s25, [#allocation4]  }
  0xee   : > { %447 = dma.vmem_to_hbm [thread:$0]  (%p463_p1), %s298_s9, 16, %s300_s12, [#allocation9]  }
  0xef   : > { %646 = dma.done.wait (%p463_p1), [#allocation4], 16  }
  0xf0   : > { %648 = vsyncadd (%p463_p1), [#allocation4], 4294967280 }
  0xf1   : > { %650 = dma.done.wait (%p463_p1), [#allocation9], 16  }
  0xf2   : > { %652 = vsyncadd (%p463_p1), [#allocation9], 4294967280 }
  0xf3 PF: > { %p17_p4 = scmp.ge.s32.totalorder %s739_s24, 5   ;;  %s834_s12 = smov %s659_s13 }
  0xf4   : > { %s835_s13 = smov %s663_s14  ;;  %s836_s14 = smov %s752_s29 }
  0xf5   : > { %s837_s15 = smov %s739_s24  ;;  %19 = sbr.rel (!%p17_p4) target bundleno = 6 (0x6), region = 81 }
  0xfa   :  { %318 = vsyncpa [#allocation3], 1 }
  0xfb   :  { %320 = vsyncpa [#allocation3 + $0x1], 1 }
  0xfc   :  { %321 = vsyncpa [#allocation6], 1 }
  0xfd   :  { %322 = vsyncpa [#allocation4], 1 }
  0xfe   :  { %324 = vsyncpa [#allocation4 + $0x1], 1 }
  0xff   :  { %325 = vsyncpa [#allocation9], 1 }

</bundles_post_ra>
